<compile_context>
chip_gen: v7x
topology: tpu7x:2x2x1
jax: 0.10.0
libtpu: 0.0.40
codegen_flags: <defaults>
</compile_context>

<pallas_src>
import jax
import jax.numpy as jnp
from jax import lax
from jax.experimental import pallas as pl
from jax.experimental.pallas import tpu as pltpu


def _mlp_kernel(x_ref,
                w1_ref, b1_ref,
                w2_ref, b2_ref,
                w3_ref, b3_ref,
                w4_ref, b4_ref,
                o_ref):
    # x and all weights arrive as bf16; accumulate in f32 on the MXU, do the
    # bias add + ReLU in f32 on the VPU, re-cast to bf16 only for the next dot.
    x = x_ref[...]

    h = jnp.dot(x, w1_ref[...], preferred_element_type=jnp.float32) + b1_ref[...]
    h = jnp.maximum(h, 0.0)

    h = jnp.dot(h.astype(jnp.bfloat16), w2_ref[...],
                preferred_element_type=jnp.float32) + b2_ref[...]
    h = jnp.maximum(h, 0.0)

    h = jnp.dot(h.astype(jnp.bfloat16), w3_ref[...],
                preferred_element_type=jnp.float32) + b3_ref[...]
    h = jnp.maximum(h, 0.0)

    # Final layer with w4 ([hid, 1]) as the LHS, contracting the hidden dim:
    # result is [1, tile_b] -> lane-dense output block (no masked 1-lane store).
    out = lax.dot_general(
        w4_ref[...], h.astype(jnp.bfloat16),
        dimension_numbers=(((0,), (1,)), ((), ())),
        preferred_element_type=jnp.float32) + b4_ref[...]
    o_ref[...] = out.astype(o_ref.dtype)


def fusion_regressor(x, params, *, tile_b=256):
    """x: [B, input_dim] float32 -> [B, 1] float32."""
    (w1, b1, w2, b2, w3, b3, w4, b4) = params
    B, d_in = x.shape

    # ---- tile-size selection -------------------------------------------
    # Keep tile_b a multiple of 128 (v5e MXU height; 256 fills v6e/v7x).
    tile_b = max(128, (tile_b // 128) * 128)
    # Don't make the tile (much) larger than the padded batch.
    tile_b = min(tile_b, 128 * pl.cdiv(B, 128))
    tile_b = max(tile_b, 128)
    # Keep grid >= 2 when the batch allows it so v7x can shard the parallel
    # batch axis across both TensorCores.
    if B > 128 and pl.cdiv(B, tile_b) < 2:
        tile_b = max(128, pl.next_power_of_2(pl.cdiv(B, 2)))

    n_tiles = pl.cdiv(B, tile_b)
    b_pad = n_tiles * tile_b

    # ---- operand preparation (wrapper-side) ------------------------------
    # Zero-pad the feature dim to a full lane group and the batch to a tile
    # multiple; cast MXU operands to bf16 (biases stay f32).
    d_pad = 128 * pl.cdiv(d_in, 128)
    x_p = jnp.pad(x, ((0, b_pad - B), (0, d_pad - d_in))).astype(jnp.bfloat16)
    w1_p = jnp.pad(w1, ((0, d_pad - d_in), (0, 0))).astype(jnp.bfloat16)
    w2_p = w2.astype(jnp.bfloat16)
    w3_p = w3.astype(jnp.bfloat16)
    w4_p = w4.astype(jnp.bfloat16)
    b1_p = b1.astype(jnp.float32)
    b2_p = b2.astype(jnp.float32)
    b3_p = b3.astype(jnp.float32)
    b4_p = b4.astype(jnp.float32)

    def rep(shape):
        # full-array block, same block index every grid step -> stays resident
        return pl.BlockSpec(shape, lambda i: (0, 0))

    out = pl.pallas_call(
        _mlp_kernel,
        out_shape=jax.ShapeDtypeStruct((1, b_pad), jnp.float32),
        grid_spec=pltpu.PrefetchScalarGridSpec(
            num_scalar_prefetch=0,
            grid=(n_tiles,),
            in_specs=[
                pl.BlockSpec((tile_b, d_pad), lambda i: (i, 0)),   # x tile
                rep(w1_p.shape), rep(b1_p.shape),
                rep(w2_p.shape), rep(b2_p.shape),
                rep(w3_p.shape), rep(b3_p.shape),
                rep(w4_p.shape), rep(b4_p.shape),
            ],
            # lane-dense output block: [1, tile_b]
            out_specs=pl.BlockSpec((1, tile_b), lambda i: (0, i)),
        ),
        compiler_params=pltpu.CompilerParams(
            dimension_semantics=("parallel",)),
    )(x_p, w1_p, b1_p, w2_p, b2_p, w3_p, b3_p, w4_p, b4_p)

    return out[0, :B].reshape(B, 1)


def init_params(key, input_dim=14, hidden_dim=128):
    """Deterministic synthetic weights (Kaiming-ish uniform like nn.Linear)."""
    dims = [(input_dim, hidden_dim),
            (hidden_dim, hidden_dim),
            (hidden_dim, hidden_dim),
            (hidden_dim, 1)]
    params = []
    for (fan_in, fan_out) in dims:
        key, kw, kb = jax.random.split(key, 3)
        bound = 1.0 / jnp.sqrt(fan_in)
        w = jax.random.uniform(kw, (fan_in, fan_out), jnp.float32, -bound, bound)
        b = jax.random.uniform(kb, (1, fan_out), jnp.float32, -bound, bound)
        params += [w, b]
    return tuple(params)


def reference_forward(x, params):
    """Pure-JAX reference mirroring the kernel's bf16-operand / f32-accum math."""
    (w1, b1, w2, b2, w3, b3, w4, b4) = params
    bf16 = jnp.bfloat16
    h = jnp.maximum(
        jnp.dot(x.astype(bf16), w1.astype(bf16),
                preferred_element_type=jnp.float32) + b1, 0.0)
    h = jnp.maximum(
        jnp.dot(h.astype(bf16), w2.astype(bf16),
                preferred_element_type=jnp.float32) + b2, 0.0)
    h = jnp.maximum(
        jnp.dot(h.astype(bf16), w3.astype(bf16),
                preferred_element_type=jnp.float32) + b3, 0.0)
    return jnp.dot(h.astype(bf16), w4.astype(bf16),
                   preferred_element_type=jnp.float32) + b4


if __name__ == "__main__":
    key = jax.random.PRNGKey(0)
    k_x, k_p = jax.random.split(key)

    B, input_dim, hidden_dim = 300, 14, 128   # B not a tile multiple on purpose
    x = jax.random.normal(k_x, (B, input_dim), jnp.float32)
    params = init_params(k_p, input_dim=input_dim, hidden_dim=hidden_dim)

    out = fusion_regressor(x, params, tile_b=256)
    out = jax.block_until_ready(out)

    ref = reference_forward(x, params)
    assert out.shape == (B, 1)
    assert jnp.allclose(out, ref, atol=1e-3, rtol=1e-3), "mismatch vs reference"

    print("KERNEL_OK")
</pallas_src>

<mosaic_0001>
module attributes {stable_mosaic.version = 11 : i64} {
  func.func @_mlp_kernel(%arg0: i32, %arg1: memref<256x128xbf16, #tpu.memory_space<vmem>>, %arg2: memref<128x128xbf16, #tpu.memory_space<vmem>>, %arg3: memref<1x128xf32, #tpu.memory_space<vmem>>, %arg4: memref<128x128xbf16, #tpu.memory_space<vmem>>, %arg5: memref<1x128xf32, #tpu.memory_space<vmem>>, %arg6: memref<128x128xbf16, #tpu.memory_space<vmem>>, %arg7: memref<1x128xf32, #tpu.memory_space<vmem>>, %arg8: memref<128x1xbf16, #tpu.memory_space<vmem>>, %arg9: memref<1x1xf32, #tpu.memory_space<vmem>>, %arg10: memref<1x256xf32, #tpu.memory_space<vmem>>) attributes {dimension_semantics = [#tpu.dimension_semantics<parallel>], iteration_bounds = array<i64: 2>, scalar_prefetch = 0 : i64, scratch_operands = 0 : i64, tpu.core_type = #tpu.core_type<tc>, window_params = [{transform_indices = @transform_0, window_bounds = array<i64: 256, 128>}, {pipeline_mode = #tpu.pipeline_mode<synchronous>, transform_indices = @transform_1, window_bounds = array<i64: 128, 128>}, {pipeline_mode = #tpu.pipeline_mode<synchronous>, transform_indices = @transform_2, window_bounds = array<i64: 1, 128>}, {pipeline_mode = #tpu.pipeline_mode<synchronous>, transform_indices = @transform_3, window_bounds = array<i64: 128, 128>}, {pipeline_mode = #tpu.pipeline_mode<synchronous>, transform_indices = @transform_4, window_bounds = array<i64: 1, 128>}, {pipeline_mode = #tpu.pipeline_mode<synchronous>, transform_indices = @transform_5, window_bounds = array<i64: 128, 128>}, {pipeline_mode = #tpu.pipeline_mode<synchronous>, transform_indices = @transform_6, window_bounds = array<i64: 1, 128>}, {pipeline_mode = #tpu.pipeline_mode<synchronous>, transform_indices = @transform_7, window_bounds = array<i64: 128, 1>}, {pipeline_mode = #tpu.pipeline_mode<synchronous>, transform_indices = @transform_8, window_bounds = array<i64: 1, 1>}, {transform_indices = @transform_9, window_bounds = array<i64: 1, 256>}]} {
    %c0 = arith.constant 0 : index
    %c0_0 = arith.constant 0 : index
    %0 = vector.load %arg1[%c0, %c0_0] : memref<256x128xbf16, #tpu.memory_space<vmem>>, vector<256x128xbf16>
    %c0_1 = arith.constant 0 : index
    %c0_2 = arith.constant 0 : index
    %1 = vector.load %arg2[%c0_1, %c0_2] : memref<128x128xbf16, #tpu.memory_space<vmem>>, vector<128x128xbf16>
    %cst = arith.constant dense<0.000000e+00> : vector<256x128xf32>
    %2 = tpu.matmul %0, %1, %cst {dimension_numbers = #tpu.dot_dimension_numbers<[1], [0], [0], [1], [0, 0, 1, 1], [], []>} : vector<256x128xbf16>, vector<128x128xbf16>, vector<256x128xf32> -> vector<256x128xf32>
    %c0_3 = arith.constant 0 : index
    %c0_4 = arith.constant 0 : index
    %3 = vector.load %arg3[%c0_3, %c0_4] : memref<1x128xf32, #tpu.memory_space<vmem>>, vector<1x128xf32>
    %4 = vector.broadcast %3 : vector<1x128xf32> to vector<256x128xf32>
    %5 = arith.addf %2, %4 : vector<256x128xf32>
    %cst_5 = arith.constant 0.000000e+00 : f32
    %6 = vector.broadcast %cst_5 : f32 to vector<256x128xf32>
    %7 = arith.maximumf %5, %6 : vector<256x128xf32>
    %8 = arith.truncf %7 : vector<256x128xf32> to vector<256x128xbf16>
    %c0_6 = arith.constant 0 : index
    %c0_7 = arith.constant 0 : index
    %9 = vector.load %arg4[%c0_6, %c0_7] : memref<128x128xbf16, #tpu.memory_space<vmem>>, vector<128x128xbf16>
    %cst_8 = arith.constant dense<0.000000e+00> : vector<256x128xf32>
    %10 = tpu.matmul %8, %9, %cst_8 {dimension_numbers = #tpu.dot_dimension_numbers<[1], [0], [0], [1], [0, 0, 1, 1], [], []>} : vector<256x128xbf16>, vector<128x128xbf16>, vector<256x128xf32> -> vector<256x128xf32>
    %c0_9 = arith.constant 0 : index
    %c0_10 = arith.constant 0 : index
    %11 = vector.load %arg5[%c0_9, %c0_10] : memref<1x128xf32, #tpu.memory_space<vmem>>, vector<1x128xf32>
    %12 = vector.broadcast %11 : vector<1x128xf32> to vector<256x128xf32>
    %13 = arith.addf %10, %12 : vector<256x128xf32>
    %cst_11 = arith.constant 0.000000e+00 : f32
    %14 = vector.broadcast %cst_11 : f32 to vector<256x128xf32>
    %15 = arith.maximumf %13, %14 : vector<256x128xf32>
    %16 = arith.truncf %15 : vector<256x128xf32> to vector<256x128xbf16>
    %c0_12 = arith.constant 0 : index
    %c0_13 = arith.constant 0 : index
    %17 = vector.load %arg6[%c0_12, %c0_13] : memref<128x128xbf16, #tpu.memory_space<vmem>>, vector<128x128xbf16>
    %cst_14 = arith.constant dense<0.000000e+00> : vector<256x128xf32>
    %18 = tpu.matmul %16, %17, %cst_14 {dimension_numbers = #tpu.dot_dimension_numbers<[1], [0], [0], [1], [0, 0, 1, 1], [], []>} : vector<256x128xbf16>, vector<128x128xbf16>, vector<256x128xf32> -> vector<256x128xf32>
    %c0_15 = arith.constant 0 : index
    %c0_16 = arith.constant 0 : index
    %19 = vector.load %arg7[%c0_15, %c0_16] : memref<1x128xf32, #tpu.memory_space<vmem>>, vector<1x128xf32>
    %20 = vector.broadcast %19 : vector<1x128xf32> to vector<256x128xf32>
    %21 = arith.addf %18, %20 : vector<256x128xf32>
    %cst_17 = arith.constant 0.000000e+00 : f32
    %22 = vector.broadcast %cst_17 : f32 to vector<256x128xf32>
    %23 = arith.maximumf %21, %22 : vector<256x128xf32>
    %c0_18 = arith.constant 0 : index
    %c0_19 = arith.constant 0 : index
    %24 = vector.load %arg8[%c0_18, %c0_19] : memref<128x1xbf16, #tpu.memory_space<vmem>>, vector<128x1xbf16>
    %25 = arith.truncf %23 : vector<256x128xf32> to vector<256x128xbf16>
    %cst_20 = arith.constant dense<0.000000e+00> : vector<1x256xf32>
    %26 = tpu.matmul %24, %25, %cst_20 {dimension_numbers = #tpu.dot_dimension_numbers<[0], [1], [1], [0], [0, 1, 1, 0], [], []>} : vector<128x1xbf16>, vector<256x128xbf16>, vector<1x256xf32> -> vector<1x256xf32>
    %c0_21 = arith.constant 0 : index
    %c0_22 = arith.constant 0 : index
    %27 = vector.load %arg9[%c0_21, %c0_22] : memref<1x1xf32, #tpu.memory_space<vmem>>, vector<1x1xf32>
    %28 = vector.broadcast %27 : vector<1x1xf32> to vector<1x256xf32>
    %29 = arith.addf %26, %28 : vector<1x256xf32>
    %c0_23 = arith.constant 0 : index
    %c0_24 = arith.constant 0 : index
    %30 = vector.load %arg10[%c0_23, %c0_24] : memref<1x256xf32, #tpu.memory_space<vmem>>, vector<1x256xf32>
    tpu.vector_store %arg10[%c0_23, %c0_24], %29 {strides = array<i32>} : memref<1x256xf32, #tpu.memory_space<vmem>>, vector<1x256xf32>,
    return
  }
  func.func @transform_0(%arg0: i32) -> (i32, i32) {
    %c0_i32 = arith.constant 0 : i32
    %c0_i32_0 = arith.constant 0 : i32
    return %arg0, %c0_i32 : i32, i32
  }
  func.func @transform_1(%arg0: i32) -> (i32, i32) {
    %c0_i32 = arith.constant 0 : i32
    %c0_i32_0 = arith.constant 0 : i32
    %c0_i32_1 = arith.constant 0 : i32
    return %c0_i32, %c0_i32_0 : i32, i32
  }
  func.func @transform_2(%arg0: i32) -> (i32, i32) {
    %c0_i32 = arith.constant 0 : i32
    %c0_i32_0 = arith.constant 0 : i32
    %c0_i32_1 = arith.constant 0 : i32
    return %c0_i32, %c0_i32_0 : i32, i32
  }
  func.func @transform_3(%arg0: i32) -> (i32, i32) {
    %c0_i32 = arith.constant 0 : i32
    %c0_i32_0 = arith.constant 0 : i32
    %c0_i32_1 = arith.constant 0 : i32
    return %c0_i32, %c0_i32_0 : i32, i32
  }
  func.func @transform_4(%arg0: i32) -> (i32, i32) {
    %c0_i32 = arith.constant 0 : i32
    %c0_i32_0 = arith.constant 0 : i32
    %c0_i32_1 = arith.constant 0 : i32
    return %c0_i32, %c0_i32_0 : i32, i32
  }
  func.func @transform_5(%arg0: i32) -> (i32, i32) {
    %c0_i32 = arith.constant 0 : i32
    %c0_i32_0 = arith.constant 0 : i32
    %c0_i32_1 = arith.constant 0 : i32
    return %c0_i32, %c0_i32_0 : i32, i32
  }
  func.func @transform_6(%arg0: i32) -> (i32, i32) {
    %c0_i32 = arith.constant 0 : i32
    %c0_i32_0 = arith.constant 0 : i32
    %c0_i32_1 = arith.constant 0 : i32
    return %c0_i32, %c0_i32_0 : i32, i32
  }
  func.func @transform_7(%arg0: i32) -> (i32, i32) {
    %c0_i32 = arith.constant 0 : i32
    %c0_i32_0 = arith.constant 0 : i32
    %c0_i32_1 = arith.constant 0 : i32
    return %c0_i32, %c0_i32_0 : i32, i32
  }
  func.func @transform_8(%arg0: i32) -> (i32, i32) {
    %c0_i32 = arith.constant 0 : i32
    %c0_i32_0 = arith.constant 0 : i32
    %c0_i32_1 = arith.constant 0 : i32
    return %c0_i32, %c0_i32_0 : i32, i32
  }
  func.func @transform_9(%arg0: i32) -> (i32, i32) {
    %c0_i32 = arith.constant 0 : i32
    %c0_i32_0 = arith.constant 0 : i32
    return %c0_i32, %arg0 : i32, i32
  }
}

</mosaic_0001>

<bundles_post_ra>
// kernel: tpu_custom_call.1
= control target key start
LH: loop header
LB: loop body
LE: loop exit
PB: predicated region body
PF: predicated region fallthrough
CT: control target
= control target key end

     0   :  { %s2731_s0 = inlined_call_operand.hbm [shape: bf16[512,128], index: 0, kind: input, shape index: {}]   ;;  %s2732_s1 = inlined_call_operand.vmem [shape: bf16[128,128], index: 1, kind: input, shape index: {}]   ;;  %s2733_s2 = inlined_call_operand.vmem [shape: f32[1,128], index: 2, kind: input, shape index: {}]   ;;  %s2734_s3 = inlined_call_operand.hbm [shape: bf16[128,128], index: 3, kind: input, shape index: {}]   ;;  %s2735_s4 = inlined_call_operand.vmem [shape: f32[1,128], index: 4, kind: input, shape index: {}]   ;;  %s2736_s5 = inlined_call_operand.hbm [shape: bf16[128,128], index: 5, kind: input, shape index: {}]   ;;  %s2737_s6 = inlined_call_operand.vmem [shape: f32[1,128], index: 6, kind: input, shape index: {}]   ;;  %s2738_s7 = inlined_call_operand.vmem [shape: bf16[128,1], index: 7, kind: input, shape index: {}]   ;;  %s2739_s8 = inlined_call_operand.<no memory space> [shape: f32[1,1], index: 8, kind: input, shape index: {}]   ;;  %s2740_s9 = inlined_call_operand.hbm [shape: f32[1,512], index: 9, kind: output, shape index: {}]  }
   0x1   :  { %v14_v0 = vstv %s2739_s8 }
   0x2   :  { %15 = vst [vmem:[#allocation2] sm:$0x1] %v14_v0 }
   0x3   :  { %16 = vsyncpa [#allocation4], 0 }
   0x4   :  { %18 = vsyncpa [#allocation4 + $0x1], 0 }
   0x5   :  { %19 = vsyncpa [#allocation7], 0 }
   0x6   :  { %20 = vsyncpa [#allocation5], 0 }
   0x7   :  { %22 = vsyncpa [#allocation5 + $0x1], 0  ;;  %s2272_s11 = smov 0   ;;  %s2274_s12 = smov 0  }
   0x8   :  { %s2276_s13 = smov 0   ;;  %s2278_s14 = smov 0  }
   0x9 LB: > { %s2293_s8 = sadd.s32 4294967295, %s2209_s14   ;;  %s1611_s15 = sadd.s32 4294967294, %s2209_s14   ;;  %s2209_s14 = sphi %s2278_s14, %s2764_s14   ;;  %s2205_s13 = sphi %s2276_s13, %s2763_s13   ;;  %s2201_s12 = sphi %s2274_s12, %s2762_s12   ;;  %s2197_s11 = sphi %s2272_s11, %s2761_s11  }
   0xa   : > { %p48_p0 = scmp.ne.s32.totalorder %s2201_s12, %s2197_s11  ;;  %p2741_p1 = scmp.eq.s32.totalorder %s2293_s8, 0 }
   0xb   : > { %p246_p3 = scmp.eq.s32.totalorder %s1611_s15, 1  ;;  %p1612_p5 = scmp.ge.s32.totalorder %s2209_s14, 1 }
   0xc   : > { %p2302_p4 = por %p2741_p1, %p48_p0  ;;  %p253_p7 = scmp.lt.s32.totalorder %s2209_s14, 3 }
   0xd   : > { %p2307_p6 = por %p246_p3, %p48_p0  ;;  %s2211_s19 = smov [#allocation6]  }
   0xe   : > { %s2746_s16 = scalar_select %p2302_p4, 1, 0 }
   0xf   : > { %s2747_s17 = scalar_select %p2307_p6, 1, 0 }
  0x10   : > { %p2312_p8 = pnand %p1612_p5, %p253_p7  ;;  %s271_s20 = sshll.u32 %s2211_s19, 4  ;;  %s2316_s20 = int_to_ptr.vmem [resolvable:$true] %s271_s20 }
  0x11   : > { %s2212_s22 = smov [#allocation8]   ;;  %s2053_s26 = scalar_lea.hbm %s2734_s3, 1024 }
  0x12   : > { %p1944_p9 = pneg %p2312_p8  ;;  %s287_s23 = sshll.u32 %s2212_s22, 4  ;;  %s2327_s23 = int_to_ptr.vmem [resolvable:$true] %s287_s23 }
  0x13   : > { %p2054_p12 = scmp.ne.s32.totalorder %s2734_s3, %s2053_s26  ;;  %p2060_p5 = scmp.lt.u32.totalorder %s2053_s26, %s2734_s3 }
  0x14   : > { %p2323_p11 = pnand %p1944_p9, %p2741_p1 }
  0x16   : > { %p2055_p13 = pneg %p2323_p11 }
  0x18   : > { %p2056_p0 = pnand %p2055_p13, %p2054_p12 }
  0x1a   : > { %p2057_p3 = pneg %p2056_p0 }
  0x1c   : > { %p2062_p7 = pnand %p2060_p5, %p2057_p3 }
  0x1e   : > { %2065 = shalt.err (!%p2062_p7)
}
  0x1f   : > { %s2066_s10 = scalar_lea.vmem %s2316_s20, 1024  ;;  %p2074_p2 = scmp.lt.s32.totalorder %s2316_s20, %s2316_s20 }
  0x20   : > { %p2067_p9 = scmp.ne.s32.totalorder %s2316_s20, %s2066_s10  ;;  %p2075_p12 = scmp.lt.s32.totalorder %s2066_s10, %s2066_s10 }
  0x22   : > { %p2069_p10 = pnand %p2067_p9, %p2055_p13  ;;  %p2076_p0 = por %p2075_p12, %p2074_p2 }
  0x24   : > { %p2070_p1 = pneg %p2069_p10 }
  0x26   : > { %p2077_p6 = pnand %p2076_p0, %p2070_p1 }
  0x28   : > { %2080 = shalt.err (!%p2077_p6)
}
  0x29   : > { %s2742_s15 = smov 64   ;;  %s2743_s19 = smov 4  }
  0x2a   : > { %1947 = dma.hbm_to_vmem [thread:$0]  (!%p2323_p11), %s2734_s3, 1024, %s2316_s20, [#allocation7], %s2742_s15, %s2742_s15, %s2743_s19  }
  0x2b   : > { %s2081_s27 = scalar_lea.hbm %s2736_s5, 1024 }
  0x2c   : > { %p2082_p1 = scmp.ne.s32.totalorder %s2736_s5, %s2081_s27  ;;  %p2088_p10 = scmp.lt.u32.totalorder %s2081_s27, %s2736_s5 }
  0x2e   : > { %p2084_p2 = pnand %p2082_p1, %p2055_p13 }
  0x30   : > { %p2085_p6 = pneg %p2084_p2 }
  0x32   : > { %p2090_p3 = pnand %p2088_p10, %p2085_p6 }
  0x34   : > { %2093 = shalt.err (!%p2090_p3)
}
  0x35   : > { %s2094_s20 = scalar_lea.vmem %s2327_s23, 1024  ;;  %p2102_p12 = scmp.lt.s32.totalorder %s2327_s23, %s2327_s23 }
  0x36   : > { %p2095_p5 = scmp.ne.s32.totalorder %s2327_s23, %s2094_s20  ;;  %p2103_p0 = scmp.lt.s32.totalorder %s2094_s20, %s2094_s20 }
  0x38   : > { %p2097_p7 = pnand %p2095_p5, %p2055_p13  ;;  %p2104_p1 = por %p2103_p0, %p2102_p12 }
  0x3a   : > { %p2098_p9 = pneg %p2097_p7 }
  0x3c   : > { %p2105_p2 = pnand %p2104_p1, %p2098_p9 }
  0x3e   : > { %2108 = shalt.err (!%p2105_p2)
}
  0x3f   : > { %1950 = dma.hbm_to_vmem [thread:$0]  (!%p2323_p11), %s2736_s5, 1024, %s2327_s23, [#allocation7], %s2742_s15, %s2742_s15, %s2743_s19  }
  0x40   : > { %s2388_s21 = sadd.s32 1, %s2209_s14   ;;  %s35_s25 = sadd.s32 1, %s2205_s13 }
  0x41   : > { %s32_s26 = ssub.s32 %s2209_s14, %s2388_s21  ;;  %p42_p13 = scmp.ne.s32.totalorder %s2205_s13, %s2201_s12 }
  0x42   : > { %p33_p6 = scmp.eq.s32.totalorder %s32_s26, 0  ;;  %p43_p10 = scmp.eq.s32.totalorder %s2209_s14, 0 }
  0x43   : > { %p2750_p3 = scmp.eq.s32.totalorder %s2293_s8, 1  ;;  %p1961_p7 = scmp.lt.s32.totalorder %s2209_s14, 2 }
  0x44   : > { %s2404_s28 = scalar_select %p33_p6, %s2205_s13, %s35_s25  }
  0x45   : > { %p2398_p5 = por %p2750_p3, %p42_p13  ;;  %p44_p9 = por %p43_p10, %p42_p13 }
  0x46   : > { %s310_s29 = sand.u32 1, %s2205_s13   ;;  %s1680_s23 = sshll.u32 %s2209_s14, 11 }
  0x47   : > { %s2751_s27 = scalar_select %p2398_p5, 1, 0 }
  0x48   : > { %s1616_s30 = sshll.u32 %s310_s29, 7  ;;  %s2411_s22 = scalar_lea.hbm %s2731_s0, %s1680_s23 }
  0x49   : > { %s314_s24 = scalar_lea.vmem [#allocation3], %s1616_s30  ;;  %p2415_p11 = pnand %p1961_p7, %p44_p9 }
  0x4a   : > { %s321_s26 = sshll.u32 %s314_s24, 4  ;;  %s2419_s15 = scalar_lea.sflag [#allocation4], %s310_s29  ;;  %s2413_s26 = int_to_ptr.vmem [resolvable:$true] %s321_s26 }
  0x4b   : > { %s2109_s19 = scalar_lea.hbm %s2411_s22, 2048  ;;  %p2111_p0 = pneg %p2415_p11 }
  0x4c   : > { %p2110_p12 = scmp.ne.s32.totalorder %s2411_s22, %s2109_s19  ;;  %s2114_s10 = scalar_lea.hbm %s2731_s0, 4096 }
  0x4d   : > { %p2115_p13 = scmp.lt.u32.totalorder %s2411_s22, %s2731_s0  ;;  %p2116_p6 = scmp.lt.u32.totalorder %s2114_s10, %s2109_s19 }
  0x4e   : > { %p2112_p1 = pnand %p2111_p0, %p2110_p12  ;;  %p2118_p3 = scmp.lt.u32.totalorder %s2109_s19, %s2411_s22 }
  0x4f   : > { %p2117_p10 = por %p2116_p6, %p2115_p13 }
  0x50   : > { %p2113_p2 = pneg %p2112_p1 }
  0x51   : > { %p2119_p7 = por %p2118_p3, %p2117_p10 }
  0x53   : > { %p2120_p9 = pnand %p2119_p7, %p2113_p2 }
  0x55   : > { %2123 = shalt.err (!%p2120_p9)
}
  0x56   : > { %s2124_s29 = scalar_lea.vmem %s2413_s26, 2048  ;;  %s2215_s30 = smov [#allocation3]  }
  0x57   : > { %p2125_p12 = scmp.ne.s32.totalorder %s2413_s26, %s2124_s29  ;;  %s2129_s23 = sshll.u32 %s2215_s30, 4  ;;  %s2130_s23 = int_to_ptr.vmem [resolvable:$false] %s2129_s23 }
  0x58   : > { %s2131_s20 = scalar_lea.vmem %s2130_s23, 4096  ;;  %p2132_p4 = scmp.lt.s32.totalorder %s2413_s26, %s2130_s23 }
  0x59   : > { %p2127_p1 = pnand %p2125_p12, %p2111_p0  ;;  %p2133_p13 = scmp.lt.s32.totalorder %s2131_s20, %s2124_s29 }
  0x5b   : > { %p2128_p5 = pneg %p2127_p1  ;;  %p2134_p6 = por %p2133_p13, %p2132_p4 }
  0x5d   : > { %p2135_p10 = pnand %p2134_p6, %p2128_p5 }
  0x5f   : > { %2138 = shalt.err (!%p2135_p10)
}
  0x60   : > { %s2753_s19 = smov 4   ;;  %s2754_s10 = smov 64  }
  0x61   : > { %1954 = dma.hbm_to_vmem [thread:$0]  (!%p2415_p11), %s2411_s22, 2048, %s2413_s26, %s2419_s15, %s2754_s10, %s2754_s10, %s2753_s19  }
  0x62   : > { %333 = sbr.rel (%p2312_p8) target bundleno = 1138 (0x472), region = 56  ;;  %s2453_s24 = sand.u32 (!%p2312_p8), 1, %s2201_s12  }
  0x63   : > { %s1620_s29 = sshll.u32 (!%p2312_p8), %s2453_s24, 7  ;;  %s336_s30 = scalar_lea.sflag (!%p2312_p8), [#allocation4], %s2453_s24 }
  0x64   : > { %s2457_s23 = scalar_lea.vmem (!%p2312_p8), [#allocation3], %s1620_s29  ;;  %p2755_p4 = scmp.ne.s32.totalorder (!%p2312_p8), %s2746_s16, 0 }
  0x69   : > { %2184 = dma.done.wait (%p2755_p4), %s336_s30, 2048  }
  0x6a   : > { %2186 = vsyncadd (%p2755_p4), %s336_s30, 4294965248  ;;  %p2756_p5 = scmp.eq.s32.totalorder %s2293_s8, 0 }
  0x6c   : > { %2188 = dma.done.wait (%p2756_p5), [#allocation7], 2048   ;;  %p2757_p8 = pmov %p2756_p5 }
  0x6d   : > { %v2005_v1 = vld [vmem:[%s2732_s1] sm:$0xff]   ;;  %v2006_v2 = vld [vmem:[%s2732_s1 + $0x8] sm:$0xff]   ;;  %v2007_v3 = vld [vmem:[%s2732_s1 + $0x10] sm:$0xff]   ;;  %s1623_s26 = sshll.u32 %s2453_s24, 1  ;;  %s1681_s16 = sshll.u32 %s2293_s8, 5 }
  0x6e   : > { %2190 = vsyncadd (%p2757_p8), [#allocation7], 4294965248  ;;  %1772 = vmatprep.subr.bf16.mxu0 %v2005_v1  ;;  %1916 = vmatprep.subr.bf16.mxu1 %v2005_v1  ;;  %v2008_v4 = vld [vmem:[%s2732_s1 + $0x18] sm:$0xff]   ;;  %v2013_v5 = vld [vmem:[%s2457_s23] sm:$0xff]   ;;  %s2687_s10 = scalar_lea.hbm %s2740_s9, %s1681_s16  ;;  %s1508_s29 = scalar_lea.sflag [#allocation5], %s2453_s24 }
  0x6f   : > { %1773 = vmatpush3.bf16.msra.mxu0 %v2005_v1  ;;  %1924 = vmatpush3.bf16.msra.mxu1 %v2005_v1  ;;  %v2009_v6 = vld [vmem:[%s2732_s1 + $0x20] sm:$0xff]   ;;  %v2010_v7 = vld [vmem:[%s2732_s1 + $0x28] sm:$0xff]   ;;  %v2011_v9 = vld [vmem:[%s2732_s1 + $0x30] sm:$0xff]   ;;  %p2758_p0 = scmp.ne.s32.totalorder %s2751_s27, 0  ;;  %s2218_s8 = smov [#allocation9]  }
  0x70   : > { %1774 = vmatprep.subr.bf16.mxu0 %v2006_v2  ;;  %1917 = vmatprep.subr.bf16.mxu1 %v2006_v2  ;;  %v2021_v8 = vld [vmem:[%s2457_s23 + $0x40] sm:$0xff]   ;;  %v2012_v10 = vld [vmem:[%s2732_s1 + $0x38] sm:$0xff]   ;;  %v2014_v11 = vld [vmem:[%s2457_s23 + $0x8] sm:$0xff]   ;;  %s2143_s18 = sshll.u32 %s2218_s8, 4  ;;  %s2144_s18 = int_to_ptr.vmem [resolvable:$false] %s2143_s18 }
  0x71   : > { %1788 = vmatprep.mubr.bf16.mxu0 %v2013_v5  ;;  %1804 = vmatprep.mubr.bf16.mxu1 %v2021_v8  ;;  %v2022_v12 = vld [vmem:[%s2457_s23 + $0x48] sm:$0xff]   ;;  %v2029_v13 = vld [vmem:[#allocation6] sm:$0xff]   ;;  %v2015_v14 = vld [vmem:[%s2457_s23 + $0x10] sm:$0xff]   ;;  %s2145_s15 = scalar_lea.vmem %s2144_s18, 64 }
  0x72   : > { %v2023_v15 = vld [vmem:[%s2457_s23 + $0x50] sm:$0xff]   ;;  %v2030_v16 = vld [vmem:[#allocation6 + $0x8] sm:$0xff]   ;;  %v2016_v18 = vld [vmem:[%s2457_s23 + $0x18] sm:$0xff]  }
  0x73   : > { %1775 = vmatpush3.bf16.msra.mxu0 %v2006_v2  ;;  %1925 = vmatpush3.bf16.msra.mxu1 %v2006_v2  ;;  %v2031_v17 = vld [vmem:[#allocation6 + $0x10] sm:$0xff]   ;;  %v2024_v19 = vld [vmem:[%s2457_s23 + $0x58] sm:$0xff]   ;;  %v2017_v20 = vld [vmem:[%s2457_s23 + $0x20] sm:$0xff]  }
  0x74   : > { %1776 = vmatprep.subr.bf16.mxu0 %v2007_v3  ;;  %1918 = vmatprep.subr.bf16.mxu1 %v2007_v3  ;;  %v2025_v21 = vld [vmem:[%s2457_s23 + $0x60] sm:$0xff]   ;;  %v2032_v22 = vld [vmem:[#allocation6 + $0x18] sm:$0xff]   ;;  %v2018_v24 = vld [vmem:[%s2457_s23 + $0x28] sm:$0xff]  }
  0x75   : > { %v2033_v23 = vld [vmem:[#allocation6 + $0x20] sm:$0xff]   ;;  %v2026_v25 = vld [vmem:[%s2457_s23 + $0x68] sm:$0xff]   ;;  %v2019_v26 = vld [vmem:[%s2457_s23 + $0x30] sm:$0xff]  }
  0x76   : > { %v2027_v27 = vld [vmem:[%s2457_s23 + $0x70] sm:$0xff]   ;;  %v2034_v28 = vld [vmem:[#allocation6 + $0x28] sm:$0xff]   ;;  %v2020_v29 = vld [vmem:[%s2457_s23 + $0x38] sm:$0xff]  }
  0x77   : > { %1777 = vmatpush3.bf16.msra.mxu0 %v2007_v3  ;;  %1926 = vmatpush3.bf16.msra.mxu1 %v2007_v3  ;;  %v2028_v30 = vld [vmem:[%s2457_s23 + $0x78] sm:$0xff]   ;;  %v2035_v31 = vld [vmem:[#allocation6 + $0x30] sm:$0xff]   ;;  %v2037_v33 = vld [vmem:[#allocation8] sm:$0xff]   ;;  %s381_s23 = scalar_lea.vmem [#allocation9], %s1623_s26 }
  0x78   : > { %1778 = vmatprep.subr.bf16.mxu0 %v2008_v4  ;;  %1919 = vmatprep.subr.bf16.mxu1 %v2008_v4  ;;  %v2036_v32 = vld [vmem:[#allocation6 + $0x38] sm:$0xff]   ;;  %v2038_v34 = vld [vmem:[#allocation8 + $0x8] sm:$0xff]   ;;  %v2039_v35 = vld [vmem:[#allocation8 + $0x10] sm:$0xff]   ;;  %s1522_s25 = sshll.u32 %s381_s23, 4  ;;  %s2689_s25 = int_to_ptr.vmem [resolvable:$true] %s1522_s25 }
  0x79   : > { %v2040_v36 = vld [vmem:[#allocation8 + $0x18] sm:$0xff]   ;;  %v2041_v37 = vld [vmem:[#allocation8 + $0x20] sm:$0xff]   ;;  %v2042_v38 = vld [vmem:[#allocation8 + $0x28] sm:$0xff]   ;;  %s2139_s30 = scalar_lea.vmem %s2689_s25, 32  ;;  %p2146_p7 = scmp.lt.s32.totalorder %s2689_s25, %s2144_s18 }
  0x7a   : > { %v2510_v39 = vld [vmem:[%s2733_s2] ss:$0 sm:$0xff]  ;;  %p2140_p11 = scmp.ne.s32.totalorder %s2689_s25, %s2139_s30  ;;  %p2147_p9 = scmp.lt.s32.totalorder %s2145_s15, %s2139_s30 }
  0x7b   : > { %1779 = vmatpush3.bf16.msra.mxu0 %v2008_v4  ;;  %1927 = vmatpush3.bf16.msra.mxu1 %v2008_v4 }
  0x7c   : > { %1780 = vmatprep.subr.bf16.mxu0 %v2009_v6  ;;  %1920 = vmatprep.subr.bf16.mxu1 %v2009_v6  ;;  %p2141_p2 = pnand %p2140_p11, %p2758_p0  ;;  %p2148_p12 = por %p2147_p9, %p2146_p7 }
  0x7e   : > { %p2142_p3 = pneg %p2141_p2 }
  0x7f   : > { %1781 = vmatpush3.bf16.msra.mxu0 %v2009_v6  ;;  %1928 = vmatpush3.bf16.msra.mxu1 %v2009_v6 }
  0x80   : > { %1782 = vmatprep.subr.bf16.mxu0 %v2010_v7  ;;  %1921 = vmatprep.subr.bf16.mxu1 %v2010_v7  ;;  %p2149_p1 = pnand %p2148_p12, %p2142_p3 }
  0x83   : > { %1783 = vmatpush3.bf16.msra.mxu0 %v2010_v7  ;;  %1929 = vmatpush3.bf16.msra.mxu1 %v2010_v7 }
  0x84   : > { %1784 = vmatprep.subr.bf16.mxu0 %v2011_v9  ;;  %1922 = vmatprep.subr.bf16.mxu1 %v2011_v9 }
  0x87   : > { %1785 = vmatpush3.bf16.msra.mxu0 %v2011_v9  ;;  %1930 = vmatpush3.bf16.msra.mxu1 %v2011_v9 }
  0x88   : > { %1786 = vmatprep.subr.bf16.mxu0 %v2012_v10  ;;  %1923 = vmatprep.subr.bf16.mxu1 %v2012_v10 }
  0x8b   : > { %1787 = vmatpush3.bf16.msra.mxu0 %v2012_v10  ;;  %1931 = vmatpush3.bf16.msra.mxu1 %v2012_v10 }
  0x8c   : > { %1820 = vmatprep.subr.bf16.mxu1 %v2029_v13  ;;  %1868 = vmatprep.subr.bf16.mxu0 %v2037_v33 }
  0x8e   : > { %1789 = vmatmul.mubr.bf16.vlgmr.msra.gmra.mrb[0].mxu0 %v2014_v11  ;;  %1805 = vmatmul.mubr.bf16.vlgmr.msra.gmra.mrb[0].mxu1 %v2022_v12 }
  0x8f   : > { %1792 = vmatprep.mubr.bf16.mxu0 %v2015_v14  ;;  %1808 = vmatprep.mubr.bf16.mxu1 %v2023_v15 }
  0x90   : > { %1821 = vmatpush3.bf16.msra.mxu1 %v2029_v13  ;;  %1869 = vmatpush3.bf16.msra.mxu0 %v2037_v33 }
  0x91   : > { %1822 = vmatprep.subr.bf16.mxu1 %v2030_v16  ;;  %1870 = vmatprep.subr.bf16.mxu0 %v2038_v34 }
  0x94   : > { %1823 = vmatpush3.bf16.msra.mxu1 %v2030_v16  ;;  %1871 = vmatpush3.bf16.msra.mxu0 %v2038_v34 }
  0x95   : > { %1824 = vmatprep.subr.bf16.mxu1 %v2031_v17  ;;  %1872 = vmatprep.subr.bf16.mxu0 %v2039_v35 }
  0x96   : > { %1793 = vmatmul.mubr.bf16.gmra.mrb[4].mxu0 %v2016_v18  ;;  %1809 = vmatmul.mubr.bf16.gmra.mrb[4].mxu1 %v2024_v19 }
  0x97   : > { %1796 = vmatprep.mubr.bf16.mxu0 %v2017_v20  ;;  %1812 = vmatprep.mubr.bf16.mxu1 %v2025_v21 }
  0x98   : > { %1825 = vmatpush3.bf16.msra.mxu1 %v2031_v17  ;;  %1873 = vmatpush3.bf16.msra.mxu0 %v2039_v35 }
  0x99   : > { %1826 = vmatprep.subr.bf16.mxu1 %v2032_v22  ;;  %1874 = vmatprep.subr.bf16.mxu0 %v2040_v36 }
  0x9c   : > { %1827 = vmatpush3.bf16.msra.mxu1 %v2032_v22  ;;  %1875 = vmatpush3.bf16.msra.mxu0 %v2040_v36 }
  0x9d   : > { %1828 = vmatprep.subr.bf16.mxu1 %v2033_v23  ;;  %1876 = vmatprep.subr.bf16.mxu0 %v2041_v37 }
  0x9e   : > { %1797 = vmatmul.mubr.bf16.gmra.mrb[8].mxu0 %v2018_v24  ;;  %1813 = vmatmul.mubr.bf16.gmra.mrb[8].mxu1 %v2026_v25 }
  0x9f   : > { %1800 = vmatprep.mubr.bf16.mxu0 %v2019_v26  ;;  %1816 = vmatprep.mubr.bf16.mxu1 %v2027_v27 }
  0xa0   : > { %1829 = vmatpush3.bf16.msra.mxu1 %v2033_v23  ;;  %1877 = vmatpush3.bf16.msra.mxu0 %v2041_v37 }
  0xa1   : > { %1830 = vmatprep.subr.bf16.mxu1 %v2034_v28  ;;  %1878 = vmatprep.subr.bf16.mxu0 %v2042_v38 }
  0xa4   : > { %1831 = vmatpush3.bf16.msra.mxu1 %v2034_v28  ;;  %1879 = vmatpush3.bf16.msra.mxu0 %v2042_v38 }
  0xa5   : > { %1832 = vmatprep.subr.bf16.mxu1 %v2035_v31 }
  0xa6   : > { %1801 = vmatmul.mubr.bf16.gmra.mrb[12].mxu0 %v2020_v29  ;;  %1817 = vmatmul.mubr.bf16.gmra.mrb[12].mxu1 %v2028_v30 }
  0xa8   : > { %1833 = vmatpush3.bf16.msra.mxu1 %v2035_v31 }
  0xa9   : > { %1834 = vmatprep.subr.bf16.mxu1 %v2036_v32 }
  0xac   : > { %1835 = vmatpush3.bf16.msra.mxu1 %v2036_v32 }
 0x161   : > { %v1790_v40 = vpop.f32.mrb[0].mxu0  ;;  %v1806_v41 = vpop.f32.mrb[0].mxu1 }
 0x162   : > { %v627_v42 = vadd.f32 %v1790_v40, %v2510_v39  ;;  %v618_v43 = vpop.f32.mrb[1].mxu0  ;;  %v691_v44 = vadd.f32 %v1806_v41, %v2510_v39  ;;  %v682_v45 = vpop.f32.mrb[1].mxu1 }
 0x163   : > { %v619_v46 = vadd.f32 %v2510_v39, %v618_v43  ;;  %v1791_v47 = vpop.f32.mrb[2].mxu0  ;;  %v683_v48 = vadd.f32 %v2510_v39, %v682_v45  ;;  %v1807_v49 = vpop.f32.mrb[2].mxu1 }
 0x164   : > { %v630_v50 = vadd.f32 %v1791_v47, %v2510_v39  ;;  %v621_v51 = vpop.f32.mrb[3].mxu0  ;;  %v763_v52 = vmax.f32 %v691_v44, 0.0  ;;  %v694_v53 = vadd.f32 %v1807_v49, %v2510_v39  ;;  %v685_v54 = vpop.f32.mrb[3].mxu1  ;;  %v747_v58 = vmax.f32 %v627_v42, 0.0 }
 0x165   : > { %v622_v55 = vadd.f32 %v2510_v39, %v621_v51  ;;  %v761_v56 = vmax.f32 %v683_v48, 0.0  ;;  %v686_v57 = vadd.f32 %v2510_v39, %v685_v54  ;;  %v745_v61 = vmax.f32 %v619_v46, 0.0 }
 0x166   : > { %v748_v59 = vmax.f32 %v630_v50, 0.0  ;;  %v764_v60 = vmax.f32 %v694_v53, 0.0 }
 0x167   : > { %v746_v62 = vmax.f32 %v622_v55, 0.0  ;;  %v762_v63 = vmax.f32 %v686_v57, 0.0 }
 0x168   : > { %v778_v0 = vpack.c.bf16 %v748_v59, %v747_v58  ;;  %v2520_v1 = vpack.c.bf16 %v764_v60, %v763_v52 }
 0x169   : > { %v777_v2 = vpack.c.bf16 %v746_v62, %v745_v61  ;;  %v1794_v3 = vpop.f32.mrb[4].mxu0  ;;  %v2522_v4 = vpack.c.bf16 %v762_v63, %v761_v56  ;;  %v1810_v5 = vpop.f32.mrb[4].mxu1 }
 0x16a   : > { %v643_v6 = vadd.f32 %v1794_v3, %v2510_v39  ;;  %v634_v7 = vpop.f32.mrb[5].mxu0  ;;  %v707_v8 = vadd.f32 %v1810_v5, %v2510_v39  ;;  %v698_v9 = vpop.f32.mrb[5].mxu1 }
 0x16b   : > { %v635_v10 = vadd.f32 %v2510_v39, %v634_v7  ;;  %v1795_v11 = vpop.f32.mrb[6].mxu0  ;;  %1836 = vmatprep.mubr.bf16.mxu1 %v777_v2  ;;  %v699_v12 = vadd.f32 %v2510_v39, %v698_v9  ;;  %v1811_v13 = vpop.f32.mrb[6].mxu1 }
 0x16c   : > { %v646_v14 = vadd.f32 %v1795_v11, %v2510_v39  ;;  %v637_v15 = vpop.f32.mrb[7].mxu0  ;;  %1837 = vmatmul.mubr.bf16.vlgmr.msra.gmra.mrb[16].mxu1 %v778_v0  ;;  %v767_v16 = vmax.f32 %v707_v8, 0.0  ;;  %v710_v17 = vadd.f32 %v1811_v13, %v2510_v39  ;;  %v701_v18 = vpop.f32.mrb[7].mxu1  ;;  %v751_v22 = vmax.f32 %v643_v6, 0.0 }
 0x16d   : > { %v638_v19 = vadd.f32 %v2510_v39, %v637_v15  ;;  %v765_v20 = vmax.f32 %v699_v12, 0.0  ;;  %v702_v21 = vadd.f32 %v2510_v39, %v701_v18  ;;  %v749_v25 = vmax.f32 %v635_v10, 0.0 }
 0x16e   : > { %v752_v23 = vmax.f32 %v646_v14, 0.0  ;;  %v768_v24 = vmax.f32 %v710_v17, 0.0 }
 0x16f   : > { %v750_v26 = vmax.f32 %v638_v19, 0.0  ;;  %v766_v27 = vmax.f32 %v702_v21, 0.0 }
 0x170   : > { %v780_v28 = vpack.c.bf16 %v752_v23, %v751_v22  ;;  %v2532_v29 = vpack.c.bf16 %v768_v24, %v767_v16 }
 0x171   : > { %v779_v30 = vpack.c.bf16 %v750_v26, %v749_v25  ;;  %v1798_v31 = vpop.f32.mrb[8].mxu0  ;;  %v2534_v32 = vpack.c.bf16 %v766_v27, %v765_v20  ;;  %v1814_v33 = vpop.f32.mrb[8].mxu1  ;;  %v2044_v27 = vld [vmem:[#allocation8 + $0x38] sm:$0xff]  }
 0x172   : > { %v659_v34 = vadd.f32 %v1798_v31, %v2510_v39  ;;  %v650_v35 = vpop.f32.mrb[9].mxu0  ;;  %v723_v36 = vadd.f32 %v1814_v33, %v2510_v39  ;;  %v714_v37 = vpop.f32.mrb[9].mxu1 }
 0x173   : > { %v651_v38 = vadd.f32 %v2510_v39, %v650_v35  ;;  %v1799_v40 = vpop.f32.mrb[10].mxu0  ;;  %1840 = vmatprep.mubr.bf16.mxu1 %v779_v30  ;;  %v715_v41 = vadd.f32 %v2510_v39, %v714_v37  ;;  %v1815_v42 = vpop.f32.mrb[10].mxu1 }
 0x174   : > { %v662_v43 = vadd.f32 %v1799_v40, %v2510_v39  ;;  %v653_v44 = vpop.f32.mrb[11].mxu0  ;;  %1841 = vmatmul.mubr.bf16.gmra.mrb[20].mxu1 %v780_v28  ;;  %v771_v45 = vmax.f32 %v723_v36, 0.0  ;;  %v726_v46 = vadd.f32 %v1815_v42, %v2510_v39  ;;  %v717_v47 = vpop.f32.mrb[11].mxu1  ;;  %v755_v51 = vmax.f32 %v659_v34, 0.0 }
 0x175   : > { %v654_v48 = vadd.f32 %v2510_v39, %v653_v44  ;;  %v769_v49 = vmax.f32 %v715_v41, 0.0  ;;  %v718_v50 = vadd.f32 %v2510_v39, %v717_v47  ;;  %v753_v54 = vmax.f32 %v651_v38, 0.0 }
 0x176   : > { %v756_v52 = vmax.f32 %v662_v43, 0.0  ;;  %v772_v53 = vmax.f32 %v726_v46, 0.0 }
 0x177   : > { %v754_v55 = vmax.f32 %v654_v48, 0.0  ;;  %v770_v56 = vmax.f32 %v718_v50, 0.0 }
 0x178   : > { %v782_v57 = vpack.c.bf16 %v756_v52, %v755_v51  ;;  %v790_v58 = vpack.c.bf16 %v772_v53, %v771_v45 }
 0x179   : > { %v781_v59 = vpack.c.bf16 %v754_v55, %v753_v54  ;;  %v1802_v60 = vpop.f32.mrb[12].mxu0  ;;  %v789_v61 = vpack.c.bf16 %v770_v56, %v769_v49  ;;  %v1818_v62 = vpop.f32.mrb[12].mxu1 }
 0x17a   : > { %v675_v63 = vadd.f32 %v1802_v60, %v2510_v39  ;;  %v666_v0 = vpop.f32.mrb[13].mxu0  ;;  %v739_v2 = vadd.f32 %v1818_v62, %v2510_v39  ;;  %v730_v3 = vpop.f32.mrb[13].mxu1 }
 0x17b   : > { %v667_v5 = vadd.f32 %v2510_v39, %v666_v0  ;;  %v1803_v6 = vpop.f32.mrb[14].mxu0  ;;  %1844 = vmatprep.mubr.bf16.mxu1 %v781_v59  ;;  %v731_v7 = vadd.f32 %v2510_v39, %v730_v3  ;;  %v1819_v8 = vpop.f32.mrb[14].mxu1 }
 0x17c   : > { %v678_v9 = vadd.f32 %v1803_v6, %v2510_v39  ;;  %v669_v10 = vpop.f32.mrb[15].mxu0  ;;  %1845 = vmatmul.mubr.bf16.gmra.mrb[24].mxu1 %v782_v57  ;;  %v775_v11 = vmax.f32 %v739_v2, 0.0  ;;  %v742_v12 = vadd.f32 %v1819_v8, %v2510_v39  ;;  %v733_v13 = vpop.f32.mrb[15].mxu1  ;;  %v759_v17 = vmax.f32 %v675_v63, 0.0 }
 0x17d   : > { %v670_v14 = vadd.f32 %v2510_v39, %v669_v10  ;;  %v773_v15 = vmax.f32 %v731_v7, 0.0  ;;  %v734_v16 = vadd.f32 %v2510_v39, %v733_v13  ;;  %v757_v20 = vmax.f32 %v667_v5, 0.0  ;;  %v2043_v39 = vld [vmem:[#allocation8 + $0x30] sm:$0xff]  }
 0x17e   : > { %v760_v18 = vmax.f32 %v678_v9, 0.0  ;;  %v776_v19 = vmax.f32 %v742_v12, 0.0  ;;  %1880 = vmatprep.subr.bf16.mxu0 %v2043_v39 }
 0x17f   : > { %v758_v21 = vmax.f32 %v670_v14, 0.0  ;;  %v774_v22 = vmax.f32 %v734_v16, 0.0  ;;  %1881 = vmatpush3.bf16.msra.mxu0 %v2043_v39 }
 0x180   : > { %v784_v23 = vpack.c.bf16 %v760_v18, %v759_v17  ;;  %v792_v24 = vpack.c.bf16 %v776_v19, %v775_v11  ;;  %1882 = vmatprep.subr.bf16.mxu0 %v2044_v27 }
 0x181   : > { %v783_v25 = vpack.c.bf16 %v758_v21, %v757_v20  ;;  %v791_v26 = vpack.c.bf16 %v774_v22, %v773_v15 }
 0x183   : > { %1848 = vmatprep.mubr.bf16.mxu1 %v783_v25  ;;  %1883 = vmatpush3.bf16.msra.mxu0 %v2044_v27 }
 0x184   : > { %1849 = vmatmul.mubr.bf16.gmra.mrb[28].mxu1 %v784_v23 }
 0x185   : > { %1852 = vmatprep.mubr.bf16.mxu1 %v2522_v4  ;;  %v2559_v4 = vld [vmem:[%s2735_s4] ss:$0 sm:$0xff] }
 0x18c   : > { %1853 = vmatmul.mubr.bf16.gmra.mrb[32].mxu1 %v2520_v1 }
 0x18d   : > { %1856 = vmatprep.mubr.bf16.mxu1 %v2534_v32 }
 0x194   : > { %1857 = vmatmul.mubr.bf16.gmra.mrb[36].mxu1 %v2532_v29 }
 0x195   : > { %1860 = vmatprep.mubr.bf16.mxu1 %v789_v61 }
 0x19c   : > { %1861 = vmatmul.mubr.bf16.gmra.mrb[40].mxu1 %v790_v58 }
 0x19d   : > { %1864 = vmatprep.mubr.bf16.mxu1 %v791_v26 }
 0x1a4   : > { %1865 = vmatmul.mubr.bf16.gmra.mrb[44].mxu1 %v792_v24 }
 0x23f   : > { %v1838_v1 = vpop.f32.mrb[16].mxu1 }
 0x240   : > { %v907_v28 = vadd.f32 %v1838_v1, %v2559_v4  ;;  %v898_v30 = vpop.f32.mrb[17].mxu1 }
 0x241   : > { %v899_v29 = vadd.f32 %v2559_v4, %v898_v30  ;;  %v1839_v31 = vpop.f32.mrb[18].mxu1 }
 0x242   : > { %v910_v32 = vadd.f32 %v1839_v31, %v2559_v4  ;;  %v901_v33 = vpop.f32.mrb[19].mxu1  ;;  %v1027_v35 = vmax.f32 %v907_v28, 0.0 }
 0x243   : > { %v902_v34 = vadd.f32 %v2559_v4, %v901_v33  ;;  %v1025_v37 = vmax.f32 %v899_v29, 0.0 }
 0x244   : > { %v1028_v36 = vmax.f32 %v910_v32, 0.0 }
 0x245   : > { %v1026_v38 = vmax.f32 %v902_v34, 0.0 }
 0x246   : > { %v1058_v40 = vpack.c.bf16 %v1028_v36, %v1027_v35 }
 0x247   : > { %v1057_v41 = vpack.c.bf16 %v1026_v38, %v1025_v37  ;;  %v1842_v42 = vpop.f32.mrb[20].mxu1 }
 0x248   : > { %v923_v43 = vadd.f32 %v1842_v42, %v2559_v4  ;;  %v914_v44 = vpop.f32.mrb[21].mxu1 }
 0x249   : > { %v915_v45 = vadd.f32 %v2559_v4, %v914_v44  ;;  %v1843_v46 = vpop.f32.mrb[22].mxu1  ;;  %1884 = vmatprep.mubr.bf16.mxu0 %v1057_v41 }
 0x24a   : > { %v926_v47 = vadd.f32 %v1843_v46, %v2559_v4  ;;  %v917_v48 = vpop.f32.mrb[23].mxu1  ;;  %1885 = vmatmul.mubr.bf16.vlgmr.msra.gmra.mrb[16].mxu0 %v1058_v40  ;;  %v1031_v50 = vmax.f32 %v923_v43, 0.0 }
 0x24b   : > { %v918_v49 = vadd.f32 %v2559_v4, %v917_v48  ;;  %v1029_v52 = vmax.f32 %v915_v45, 0.0 }
 0x24c   : > { %v1032_v51 = vmax.f32 %v926_v47, 0.0 }
 0x24d   : > { %v1030_v53 = vmax.f32 %v918_v49, 0.0 }
 0x24e   : > { %v1060_v54 = vpack.c.bf16 %v1032_v51, %v1031_v50 }
 0x24f   : > { %v1059_v55 = vpack.c.bf16 %v1030_v53, %v1029_v52  ;;  %v1846_v56 = vpop.f32.mrb[24].mxu1 }
 0x250   : > { %v939_v57 = vadd.f32 %v1846_v56, %v2559_v4  ;;  %v930_v58 = vpop.f32.mrb[25].mxu1 }
 0x251   : > { %v931_v59 = vadd.f32 %v2559_v4, %v930_v58  ;;  %v1847_v60 = vpop.f32.mrb[26].mxu1  ;;  %1888 = vmatprep.mubr.bf16.mxu0 %v1059_v55 }
 0x252   : > { %v942_v61 = vadd.f32 %v1847_v60, %v2559_v4  ;;  %v933_v62 = vpop.f32.mrb[27].mxu1  ;;  %1889 = vmatmul.mubr.bf16.gmra.mrb[20].mxu0 %v1060_v54  ;;  %v1035_v0 = vmax.f32 %v939_v57, 0.0 }
 0x253   : > { %v934_v63 = vadd.f32 %v2559_v4, %v933_v62  ;;  %v1033_v3 = vmax.f32 %v931_v59, 0.0 }
 0x254   : > { %v1036_v2 = vmax.f32 %v942_v61, 0.0 }
 0x255   : > { %v1034_v5 = vmax.f32 %v934_v63, 0.0 }
 0x256   : > { %v1062_v6 = vpack.c.bf16 %v1036_v2, %v1035_v0 }
 0x257   : > { %v1061_v7 = vpack.c.bf16 %v1034_v5, %v1033_v3  ;;  %v1850_v8 = vpop.f32.mrb[28].mxu1 }
 0x258   : > { %v955_v9 = vadd.f32 %v1850_v8, %v2559_v4  ;;  %v946_v10 = vpop.f32.mrb[29].mxu1 }
 0x259   : > { %v947_v11 = vadd.f32 %v2559_v4, %v946_v10  ;;  %v1851_v12 = vpop.f32.mrb[30].mxu1  ;;  %1892 = vmatprep.mubr.bf16.mxu0 %v1061_v7 }
 0x25a   : > { %v958_v13 = vadd.f32 %v1851_v12, %v2559_v4  ;;  %v949_v14 = vpop.f32.mrb[31].mxu1  ;;  %1893 = vmatmul.mubr.bf16.gmra.mrb[24].mxu0 %v1062_v6  ;;  %v1039_v16 = vmax.f32 %v955_v9, 0.0 }
 0x25b   : > { %v950_v15 = vadd.f32 %v2559_v4, %v949_v14  ;;  %v1037_v18 = vmax.f32 %v947_v11, 0.0 }
 0x25c   : > { %v1040_v17 = vmax.f32 %v958_v13, 0.0 }
 0x25d   : > { %v1038_v19 = vmax.f32 %v950_v15, 0.0  ;;  %v2045_v15 = vld [vmem:[%s2738_s7] sm:$0xff]  }
 0x25e   : > { %v1064_v20 = vpack.c.bf16 %v1040_v17, %v1039_v16  ;;  %1427 = vxpose.xlu0.c.b16.start [1/8] (narrow) %v2045_v15, 16  ;;  %v2046_v16 = vld [vmem:[%s2738_s7 + $0x8] sm:$0xff]   ;;  %v2048_v17 = vld [vmem:[%s2738_s7 + $0x18] sm:$0xff]  }
 0x25f   : > { %v1063_v21 = vpack.c.bf16 %v1038_v19, %v1037_v18  ;;  %v1854_v22 = vpop.f32.mrb[32].mxu1  ;;  %v2049_v18 = vld [vmem:[%s2738_s7 + $0x20] sm:$0xff]   ;;  %v2050_v19 = vld [vmem:[%s2738_s7 + $0x28] sm:$0xff]  }
 0x260   : > { %v971_v23 = vadd.f32 %v1854_v22, %v2559_v4  ;;  %v962_v24 = vpop.f32.mrb[33].mxu1 }
 0x261   : > { %v963_v25 = vadd.f32 %v2559_v4, %v962_v24  ;;  %v1855_v26 = vpop.f32.mrb[34].mxu1  ;;  %1896 = vmatprep.mubr.bf16.mxu0 %v1063_v21  ;;  %v2052_v21 = vld [vmem:[%s2738_s7 + $0x38] sm:$0xff]   ;;  %v2216_v24 = vmov 0  }
 0x262   : > { %v974_v39 = vadd.f32 %v1855_v26, %v2559_v4  ;;  %v965_v27 = vpop.f32.mrb[35].mxu1  ;;  %1897 = vmatmul.mubr.bf16.gmra.mrb[28].mxu0 %v1064_v20  ;;  %v1043_v28 = vmax.f32 %v971_v23, 0.0  ;;  %1428 = vxpose.xlu0.c.b16.cont [2/8] (narrow) %v2046_v16, 16  ;;  %v2051_v20 = vld [vmem:[%s2738_s7 + $0x30] sm:$0xff]   ;;  %v1369_v23 = vld [vmem:[#allocation2] sm:$0x1] }
 0x263   : > { %v966_v1 = vadd.f32 %v2559_v4, %v965_v27  ;;  %v1041_v29 = vmax.f32 %v963_v25, 0.0  ;;  %2003 = vset.pattern.permute.xlu1 %v2216_v24  ;;  %v2623_v25 = vld [vmem:[%s2737_s6] ss:$0 sm:$0xff] }
 0x264   : > { %v1044_v30 = vmax.f32 %v974_v39, 0.0  ;;  %1372 = vperm.xlu1 %2003, %v1369_v23  }
 0x265   : > { %v1042_v31 = vmax.f32 %v966_v1, 0.0 }
 0x266   : > { %v1066_v32 = vpack.c.bf16 %v1044_v30, %v1043_v28 }
 0x267   : > { %v1065_v33 = vpack.c.bf16 %v1042_v31, %v1041_v29  ;;  %v1858_v34 = vpop.f32.mrb[36].mxu1 }
 0x268   : > { %v987_v35 = vadd.f32 %v1858_v34, %v2559_v4  ;;  %v978_v36 = vpop.f32.mrb[37].mxu1 }
 0x269   : > { %v979_v37 = vadd.f32 %v2559_v4, %v978_v36  ;;  %v1859_v38 = vpop.f32.mrb[38].mxu1  ;;  %1900 = vmatprep.mubr.bf16.mxu0 %v1065_v33 }
 0x26a   : > { %v1047_v40 = vmax.f32 %v987_v35, 0.0  ;;  %v990_v41 = vadd.f32 %v1859_v38, %v2559_v4  ;;  %v981_v42 = vpop.f32.mrb[39].mxu1  ;;  %1901 = vmatmul.mubr.bf16.gmra.mrb[32].mxu0 %v1066_v32 }
 0x26b   : > { %v1045_v43 = vmax.f32 %v979_v37, 0.0  ;;  %v982_v44 = vadd.f32 %v2559_v4, %v981_v42 }
 0x26c   : > { %v1048_v45 = vmax.f32 %v990_v41, 0.0 }
 0x26d   : > { %v1046_v46 = vmax.f32 %v982_v44, 0.0 }
 0x26e   : > { %v1068_v47 = vpack.c.bf16 %v1048_v45, %v1047_v40 }
 0x26f   : > { %v1067_v48 = vpack.c.bf16 %v1046_v46, %v1045_v43  ;;  %v1862_v49 = vpop.f32.mrb[40].mxu1 }
 0x270   : > { %v1003_v50 = vadd.f32 %v1862_v49, %v2559_v4  ;;  %v994_v51 = vpop.f32.mrb[41].mxu1 }
 0x271   : > { %1904 = vmatprep.mubr.bf16.mxu0 %v1067_v48  ;;  %v995_v52 = vadd.f32 %v2559_v4, %v994_v51  ;;  %v1863_v53 = vpop.f32.mrb[42].mxu1 }
 0x272   : > { %1905 = vmatmul.mubr.bf16.gmra.mrb[36].mxu0 %v1068_v47  ;;  %v1051_v54 = vmax.f32 %v1003_v50, 0.0  ;;  %v1006_v55 = vadd.f32 %v1863_v53, %v2559_v4  ;;  %v997_v56 = vpop.f32.mrb[43].mxu1 }
 0x273   : > { %v1049_v57 = vmax.f32 %v995_v52, 0.0  ;;  %v998_v58 = vadd.f32 %v2559_v4, %v997_v56 }
 0x274   : > { %v1052_v59 = vmax.f32 %v1006_v55, 0.0 }
 0x275   : > { %v1050_v60 = vmax.f32 %v998_v58, 0.0 }
 0x276   : > { %v1070_v61 = vpack.c.bf16 %v1052_v59, %v1051_v54 }
 0x277   : > { %v1069_v62 = vpack.c.bf16 %v1050_v60, %v1049_v57  ;;  %v1866_v63 = vpop.f32.mrb[44].mxu1 }
 0x278   : > { %v1019_v0 = vadd.f32 %v1866_v63, %v2559_v4  ;;  %v1010_v2 = vpop.f32.mrb[45].mxu1 }
 0x279   : > { %1908 = vmatprep.mubr.bf16.mxu0 %v1069_v62  ;;  %v1011_v3 = vadd.f32 %v2559_v4, %v1010_v2  ;;  %v1867_v5 = vpop.f32.mrb[46].mxu1 }
 0x27a   : > { %1909 = vmatmul.mubr.bf16.gmra.mrb[40].mxu0 %v1070_v61  ;;  %v1055_v6 = vmax.f32 %v1019_v0, 0.0  ;;  %v1022_v7 = vadd.f32 %v1867_v5, %v2559_v4  ;;  %v1013_v8 = vpop.f32.mrb[47].mxu1 }
 0x27b   : > { %v1053_v9 = vmax.f32 %v1011_v3, 0.0  ;;  %v1014_v10 = vadd.f32 %v2559_v4, %v1013_v8  ;;  %v2047_v4 = vld [vmem:[%s2738_s7 + $0x10] sm:$0xff]  }
 0x27c   : > { %v1056_v11 = vmax.f32 %v1022_v7, 0.0  ;;  %1429 = vxpose.xlu0.c.b16.cont [3/8] (narrow) %v2047_v4, 16 }
 0x27d   : > { %v1054_v12 = vmax.f32 %v1014_v10, 0.0 }
 0x27e   : > { %v1072_v13 = vpack.c.bf16 %v1056_v11, %v1055_v6 }
 0x27f   : > { %v1071_v14 = vpack.c.bf16 %v1054_v12, %v1053_v9 }
 0x280   : > { %1430 = vxpose.xlu0.c.b16.cont [4/8] (narrow) %v2048_v17, 16 }
 0x281   : > { %1912 = vmatprep.mubr.bf16.mxu0 %v1071_v14 }
 0x282   : > { %1913 = vmatmul.mubr.bf16.gmra.mrb[44].mxu0 %v1072_v13 }
 0x284   : > { %1431 = vxpose.xlu0.c.b16.cont [5/8] (narrow) %v2049_v18, 16 }
 0x288   : > { %1432 = vxpose.xlu0.c.b16.cont [6/8] (narrow) %v2050_v19, 16 }
 0x28c   : > { %1433 = vxpose.xlu0.c.b16.cont [7/8] (narrow) %v2051_v20, 16 }
 0x290   : > { %1434 = vxpose.xlu0.c.b16.end [8/8] (narrow) %v2052_v21, 16 }
 0x299   : > { %2004 = vset.pattern.permute.xlu0 %v2216_v24 }
 0x2da   : > { %v2617_v22 = vpop.trf.xlu0 }
 0x2db   : > { %1770 = vmatprep.mubr.bf16.mxu1 %v2617_v22 }
 0x31d   : > { %v1886_v26 = vpop.f32.mrb[16].mxu0 }
 0x31e   : > { %v1187_v39 = vadd.f32 %v1886_v26, %v2623_v25  ;;  %v1178_v27 = vpop.f32.mrb[17].mxu0 }
 0x31f   : > { %v1179_v1 = vadd.f32 %v2623_v25, %v1178_v27  ;;  %v1887_v28 = vpop.f32.mrb[18].mxu0 }
 0x320   : > { %v1190_v30 = vadd.f32 %v1887_v28, %v2623_v25  ;;  %v1181_v29 = vpop.f32.mrb[19].mxu0  ;;  %v1307_v32 = vmax.f32 %v1187_v39, 0.0 }
 0x321   : > { %v1182_v31 = vadd.f32 %v2623_v25, %v1181_v29  ;;  %v1305_v34 = vmax.f32 %v1179_v1, 0.0 }
 0x322   : > { %v1308_v33 = vmax.f32 %v1190_v30, 0.0 }
 0x323   : > { %v1306_v35 = vmax.f32 %v1182_v31, 0.0 }
 0x324   : > { %v2629_v36 = vpack.c.bf16 %v1308_v33, %v1307_v32 }
 0x325   : > { %v2631_v37 = vpack.c.bf16 %v1306_v35, %v1305_v34  ;;  %v1890_v38 = vpop.f32.mrb[20].mxu0 }
 0x326   : > { %v1203_v40 = vadd.f32 %v1890_v38, %v2623_v25  ;;  %v1194_v41 = vpop.f32.mrb[21].mxu0 }
 0x327   : > { %v1195_v42 = vadd.f32 %v2623_v25, %v1194_v41  ;;  %v1891_v43 = vpop.f32.mrb[22].mxu0 }
 0x328   : > { %v1206_v44 = vadd.f32 %v1891_v43, %v2623_v25  ;;  %v1197_v45 = vpop.f32.mrb[23].mxu0  ;;  %v1311_v47 = vmax.f32 %v1203_v40, 0.0 }
 0x329   : > { %v1198_v46 = vadd.f32 %v2623_v25, %v1197_v45  ;;  %v1309_v49 = vmax.f32 %v1195_v42, 0.0 }
 0x32a   : > { %v1312_v48 = vmax.f32 %v1206_v44, 0.0 }
 0x32b   : > { %v1310_v50 = vmax.f32 %v1198_v46, 0.0 }
 0x32c   : > { %v2637_v51 = vpack.c.bf16 %v1312_v48, %v1311_v47 }
 0x32d   : > { %v2639_v52 = vpack.c.bf16 %v1310_v50, %v1309_v49  ;;  %v1894_v53 = vpop.f32.mrb[24].mxu0 }
 0x32e   : > { %v1219_v54 = vadd.f32 %v1894_v53, %v2623_v25  ;;  %v1210_v55 = vpop.f32.mrb[25].mxu0 }
 0x32f   : > { %v1211_v56 = vadd.f32 %v2623_v25, %v1210_v55  ;;  %v1895_v57 = vpop.f32.mrb[26].mxu0 }
 0x330   : > { %v1222_v58 = vadd.f32 %v1895_v57, %v2623_v25  ;;  %v1213_v59 = vpop.f32.mrb[27].mxu0  ;;  %v1315_v61 = vmax.f32 %v1219_v54, 0.0 }
 0x331   : > { %v1214_v60 = vadd.f32 %v2623_v25, %v1213_v59  ;;  %v1313_v63 = vmax.f32 %v1211_v56, 0.0 }
 0x332   : > { %v1316_v62 = vmax.f32 %v1222_v58, 0.0 }
 0x333   : > { %v1314_v0 = vmax.f32 %v1214_v60, 0.0 }
 0x334   : > { %v2645_v2 = vpack.c.bf16 %v1316_v62, %v1315_v61 }
 0x335   : > { %v2647_v3 = vpack.c.bf16 %v1314_v0, %v1313_v63  ;;  %v1898_v5 = vpop.f32.mrb[28].mxu0 }
 0x336   : > { %v1235_v6 = vadd.f32 %v1898_v5, %v2623_v25  ;;  %v1226_v7 = vpop.f32.mrb[29].mxu0 }
 0x337   : > { %v1227_v8 = vadd.f32 %v2623_v25, %v1226_v7  ;;  %v1899_v9 = vpop.f32.mrb[30].mxu0 }
 0x338   : > { %v1238_v10 = vadd.f32 %v1899_v9, %v2623_v25  ;;  %v1229_v11 = vpop.f32.mrb[31].mxu0  ;;  %v1319_v13 = vmax.f32 %v1235_v6, 0.0 }
 0x339   : > { %v1230_v12 = vadd.f32 %v2623_v25, %v1229_v11  ;;  %v1317_v15 = vmax.f32 %v1227_v8, 0.0 }
 0x33a   : > { %v1320_v14 = vmax.f32 %v1238_v10, 0.0 }
 0x33b   : > { %v1318_v16 = vmax.f32 %v1230_v12, 0.0 }
 0x33c   : > { %v2653_v4 = vpack.c.bf16 %v1320_v14, %v1319_v13 }
 0x33d   : > { %v2655_v17 = vpack.c.bf16 %v1318_v16, %v1317_v15  ;;  %v1902_v18 = vpop.f32.mrb[32].mxu0 }
 0x33e   : > { %v1251_v19 = vadd.f32 %v1902_v18, %v2623_v25  ;;  %v1242_v20 = vpop.f32.mrb[33].mxu0 }
 0x33f   : > { %v1243_v21 = vadd.f32 %v2623_v25, %v1242_v20  ;;  %v1903_v23 = vpop.f32.mrb[34].mxu0 }
 0x340   : > { %v1254_v24 = vadd.f32 %v1903_v23, %v2623_v25  ;;  %v1245_v26 = vpop.f32.mrb[35].mxu0  ;;  %v1323_v27 = vmax.f32 %v1251_v19, 0.0  ;;  %v2217_v19 = vmov 1966171168  }
 0x341   : > { %v1246_v39 = vadd.f32 %v2623_v25, %v1245_v26  ;;  %v1321_v28 = vmax.f32 %v1243_v21, 0.0  ;;  %v1488_v20 = vunpack.c.l.s4 %v2217_v19 }
 0x342   : > { %v1324_v1 = vmax.f32 %v1254_v24, 0.0 }
 0x343   : > { %v1322_v30 = vmax.f32 %v1246_v39, 0.0  ;;  %v1489_v21 = vunpack.c.0.s8 %v1488_v20 }
 0x344   : > { %v1362_v29 = vpack.c.bf16 %v1324_v1, %v1323_v27 }
 0x345   : > { %v1361_v31 = vpack.c.bf16 %v1322_v30, %v1321_v28  ;;  %v1906_v32 = vpop.f32.mrb[36].mxu0 }
 0x346   : > { %v1267_v33 = vadd.f32 %v1906_v32, %v2623_v25  ;;  %v1258_v34 = vpop.f32.mrb[37].mxu0 }
 0x347   : > { %v1259_v35 = vadd.f32 %v2623_v25, %v1258_v34  ;;  %v1907_v38 = vpop.f32.mrb[38].mxu0  ;;  %1754 = vmatprep.subr.bf16.mxu1 %v1361_v31 }
 0x348   : > { %v1270_v40 = vadd.f32 %v1907_v38, %v2623_v25  ;;  %v1261_v41 = vpop.f32.mrb[39].mxu0  ;;  %1755 = vmatpush3.bf16.xpose.msra.mxu1 %v2631_v37  ;;  %v1327_v43 = vmax.f32 %v1267_v33, 0.0 }
 0x349   : > { %v1262_v42 = vadd.f32 %v2623_v25, %v1261_v41  ;;  %1756 = vmatprep.subr.bf16.mxu1 %v1362_v29  ;;  %v1325_v45 = vmax.f32 %v1259_v35, 0.0 }
 0x34a   : > { %v1328_v44 = vmax.f32 %v1270_v40, 0.0 }
 0x34b   : > { %v1326_v46 = vmax.f32 %v1262_v42, 0.0 }
 0x34c   : > { %v1364_v47 = vpack.c.bf16 %v1328_v44, %v1327_v43 }
 0x34d   : > { %v1363_v48 = vpack.c.bf16 %v1326_v46, %v1325_v45  ;;  %v1910_v49 = vpop.f32.mrb[40].mxu0 }
 0x34e   : > { %v1283_v50 = vadd.f32 %v1910_v49, %v2623_v25  ;;  %v1274_v53 = vpop.f32.mrb[41].mxu0 }
 0x34f   : > { %v1275_v54 = vadd.f32 %v2623_v25, %v1274_v53  ;;  %v1911_v55 = vpop.f32.mrb[42].mxu0 }
 0x350   : > { %1757 = vmatpush3.bf16.xpose.msra.mxu1 %v2629_v36  ;;  %v1331_v56 = vmax.f32 %v1283_v50, 0.0  ;;  %v1286_v37 = vadd.f32 %v1911_v55, %v2623_v25  ;;  %v1277_v57 = vpop.f32.mrb[43].mxu0 }
 0x351   : > { %1758 = vmatprep.subr.bf16.mxu1 %v1363_v48  ;;  %v1329_v58 = vmax.f32 %v1275_v54, 0.0  ;;  %v1278_v59 = vadd.f32 %v2623_v25, %v1277_v57 }
 0x352   : > { %v1332_v60 = vmax.f32 %v1286_v37, 0.0 }
 0x353   : > { %v1330_v61 = vmax.f32 %v1278_v59, 0.0 }
 0x354   : > { %v1366_v62 = vpack.c.bf16 %v1332_v60, %v1331_v56 }
 0x355   : > { %v1365_v63 = vpack.c.bf16 %v1330_v61, %v1329_v58  ;;  %v1914_v0 = vpop.f32.mrb[44].mxu0 }
 0x356   : > { %v1299_v5 = vadd.f32 %v1914_v0, %v2623_v25  ;;  %v1290_v6 = vpop.f32.mrb[45].mxu0 }
 0x357   : > { %v1291_v7 = vadd.f32 %v2623_v25, %v1290_v6  ;;  %v1915_v8 = vpop.f32.mrb[46].mxu0 }
 0x358   : > { %1759 = vmatpush3.bf16.xpose.msra.mxu1 %v2639_v52  ;;  %v1335_v36 = vmax.f32 %v1299_v5, 0.0  ;;  %v1302_v9 = vadd.f32 %v1915_v8, %v2623_v25  ;;  %v1293_v10 = vpop.f32.mrb[47].mxu0 }
 0x359   : > { %1760 = vmatprep.subr.bf16.mxu1 %v1364_v47  ;;  %v1333_v11 = vmax.f32 %v1291_v7, 0.0  ;;  %v1294_v12 = vadd.f32 %v2623_v25, %v1293_v10  ;;  %v1375_v25 = vlaneseq }
 0x35a   : > { %v1336_v13 = vmax.f32 %v1302_v9, 0.0 }
 0x35b   : > { %v1334_v14 = vmax.f32 %v1294_v12, 0.0  ;;  %v1376_v52 = vshrl.u32 %v1375_v25, 7  ;;  %vm1504_vm0 = vcmp.lt.s32.totalorder %v1375_v25, 256 }
 0x35c   : > { %v1368_v15 = vpack.c.bf16 %v1336_v13, %v1335_v36 }
 0x35d   : > { %v1367_v16 = vpack.c.bf16 %v1334_v14, %v1333_v11  ;;  %v1377_v18 = vsub.s32 0, %v1376_v52  ;;  %v1492_v26 = vsub.s32 %v1489_v21, %v1376_v52 }
 0x360   : > { %1761 = vmatpush3.bf16.xpose.msra.mxu1 %v2637_v51  ;;  %v1373_v51 = vpop.permute.xlu1 %1372 }
 0x361   : > { %1762 = vmatprep.subr.bf16.mxu1 %v1365_v63 }
 0x368   : > { %1763 = vmatpush3.bf16.xpose.msra.mxu1 %v2647_v3  ;;  %v1378_v3 = vrot.slane %v1373_v51, %v1377_v18 }
 0x369   : > { %1764 = vmatprep.subr.bf16.mxu1 %v1366_v62 }
 0x370   : > { %1765 = vmatpush3.bf16.xpose.msra.mxu1 %v2645_v2 }
 0x371   : > { %1766 = vmatprep.subr.bf16.mxu1 %v1367_v16 }
 0x378   : > { %1767 = vmatpush3.bf16.xpose.msra.mxu1 %v2655_v17 }
 0x379   : > { %1768 = vmatprep.subr.bf16.mxu1 %v1368_v15 }
 0x380   : > { %1769 = vmatpush3.bf16.xpose.msra.mxu1 %v2653_v4 }
 0x387   : > { %1771 = vmatmul.mubr.bf16.vlgmr.msra.gmra.mrb[48].mxu1 %v2617_v22 }
 0x45a   : > { %v1477_v23 = vpop.f32.mrb[48].mxu1 }
 0x45b   : > { %v1478_v2 = vadd.f32 %v1477_v23, %v1378_v3  ;;  %v1479_v24 = vpop.f32.mrb[49].mxu1 }
 0x45c   : > { %v1480_v17 = vadd.f32 %v1479_v24, %v1378_v3  ;;  %v1481_v4 = vpop.f32.mrb[50].mxu1 }
 0x45d   : > { %v1482_v39 = vpop.f32.mrb[51].mxu1 }
 0x45e   : > { %v1486_v22 = vcombine.low %v1478_v2, %v1480_v17 }
 0x460   : > { %v1493_v27 = vrot.slane %v1486_v22, %v1492_v26 }
 0x462   : > { %v1500_v1 = vrot.slane %v1493_v27, %v1492_v26 }
 0x464   : > { %1506 = vst.msk [vmem:[%s381_s23] sm:$0x3] %vm1504_vm0, %v1500_v1 }
 0x465   : > { %2152 = shalt.err (!%p2149_p1)
}
 0x466   : > { %s2153_s24 = scalar_lea.hbm %s2687_s10, 32  ;;  %s2157_s16 = scalar_lea.hbm %s2740_s9, 64 }
 0x467   : > { %p2154_p13 = scmp.ne.s32.totalorder %s2687_s10, %s2153_s24  ;;  %p2158_p4 = scmp.lt.u32.totalorder %s2687_s10, %s2740_s9 }
 0x468   : > { %p2159_p5 = scmp.lt.u32.totalorder %s2157_s16, %s2153_s24  ;;  %p2161_p11 = scmp.lt.u32.totalorder %s2153_s24, %s2687_s10 }
 0x469   : > { %p2155_p6 = pnand %p2154_p13, %p2758_p0 }
 0x46a   : > { %p2160_p8 = por %p2159_p5, %p2158_p4 }
 0x46b   : > { %p2156_p10 = pneg %p2155_p6 }
 0x46c   : > { %p2162_p2 = por %p2161_p11, %p2160_p8 }
 0x46e   : > { %p2163_p3 = pnand %p2162_p2, %p2156_p10 }
 0x470   : > { %2166 = shalt.err (!%p2163_p3)
}
 0x471   : > { %1942 = dma.vmem_to_hbm [thread:$0]  (%p2758_p0), %s2689_s25, 32, %s2687_s10, %s1508_s29  }
 0x472 PF: > { %s1534_s19 = sand.u32 1, %s2197_s11   ;;  %p2759_p7 = scmp.ne.s32.totalorder %s2747_s17, 0 }
 0x473   : > { %p2760_p9 = scmp.ge.s32.totalorder %s2209_s14, 2  ;;  %s1535_s30 = scalar_lea.sflag [#allocation5], %s1534_s19 }
 0x475   : > { %p1956_p12 = pnand %p2760_p9, %p2759_p7 }
 0x477   : > { %2192 = dma.done.wait (!%p1956_p12), %s1535_s30, 32  }
 0x478   : > { %2194 = vsyncadd (!%p1956_p12), %s1535_s30, 4294967264  ;;  %p25_p1 = scmp.ge.s32.totalorder %s2388_s21, 4   ;;  %s2761_s11 = smov %s2201_s12 }
 0x479   : > { %s2762_s12 = smov %s2205_s13  ;;  %s2763_s13 = smov %s2404_s28 }
 0x47a   : > { %s2764_s14 = smov %s2388_s21  ;;  %27 = sbr.rel (!%p25_p1) target bundleno = 9 (0x9), region = 109 }
 0x481   :  { %1540 = vsyncpa [#allocation4], 1 }
 0x482   :  { %1542 = vsyncpa [#allocation4 + $0x1], 1 }
 0x483   :  { %1543 = vsyncpa [#allocation7], 1 }
 0x484   :  { %1544 = vsyncpa [#allocation5], 1 }
 0x485   :  { %1546 = vsyncpa [#allocation5 + $0x1], 1 }

</bundles_post_ra>
